<compile_context>
chip_gen: v5e
topology: v5e:2x2
jax: 0.10.0
libtpu: 0.0.40
codegen_flags: <defaults>
</compile_context>

<pallas_src>
import functools

import numpy as np
import jax
import jax.numpy as jnp
from jax.experimental import pallas as pl
from jax.experimental.pallas import tpu as pltpu


# ----------------------------------------------------------------------------
# Single fused kernel: one GEMM (folded convT + FC) + hardswish epilogue
# ----------------------------------------------------------------------------
def _fused_fc_hardswish_kernel(x_ref, w_ref, b_ref, o_ref):
    # (N, K) x (K, Nb) on the bf16 MXU path, f32 accumulation.
    v3 = jnp.dot(x_ref[...].astype(w_ref.dtype), w_ref[...],
                 preferred_element_type=jnp.float32) + b_ref[...]
    # hardswish-style epilogue: v3 * clamp(v3 + 3, 0, 6) / 6
    v6 = jnp.minimum(jnp.maximum(v3 + 3.0, 0.0), 6.0)
    o_ref[...] = (v3 * v6 * (1.0 / 6.0)).astype(o_ref.dtype)


@functools.partial(jax.jit, static_argnames=("n_col_blocks",))
def _forward_impl(x1, w_total, b_eff, n_col_blocks):
    N = x1.shape[0]
    K, Nout = w_total.shape
    nb = Nout // n_col_blocks

    # Free NCHW flatten: column index = cin*(H*W) + h*W + w, matching the row
    # order baked into W_total at fold time.  No transpose on the hot path.
    x2d = x1.reshape(N, K)

    flops = 2 * N * K * Nout
    bytes_accessed = (x2d.size * x2d.dtype.itemsize
                      + w_total.size * w_total.dtype.itemsize
                      + b_eff.size * b_eff.dtype.itemsize
                      + N * Nout * x1.dtype.itemsize)

    return pl.pallas_call(
        _fused_fc_hardswish_kernel,
        out_shape=jax.ShapeDtypeStruct((N, Nout), x1.dtype),
        grid=(n_col_blocks,),
        in_specs=[
            pl.BlockSpec((N, K), lambda j: (0, 0)),
            pl.BlockSpec((K, nb), lambda j: (0, j)),
            pl.BlockSpec((1, nb), lambda j: (0, j)),
        ],
        out_specs=pl.BlockSpec((N, nb), lambda j: (0, j)),
        compiler_params=pltpu.CompilerParams(
            dimension_semantics=("parallel",)),
        cost_estimate=pl.CostEstimate(flops=flops, transcendentals=0,
                                      bytes_accessed=bytes_accessed),
    )(x2d, w_total, b_eff)


def model_forward(x1, prep):
    """x1: (N, Cin, H, W) NCHW.  prep: output of prepare_params."""
    expect = prep["input_shape"]
    if tuple(x1.shape[1:]) != tuple(expect[1:]):
        raise ValueError(
            f"prepare_params folded weights for input shape {expect}; "
            f"got {tuple(x1.shape)} (re-run prepare_params for this shape).")
    return _forward_impl(x1, prep["w_total"], prep["b_eff"],
                         prep["n_col_blocks"])


# ----------------------------------------------------------------------------
# One-time (init) weight folding — hoisted out of the traced forward pass.
# ----------------------------------------------------------------------------
def _tensorcores_per_chip():
    """Best-effort TC-per-chip count (2 on v7x-class chips, 1 on v5e/v6e)."""
    try:
        dev = jax.devices()[0]
        for attr in ("num_cores", "core_count", "num_tensorcores"):
            v = getattr(dev, attr, None)
            if isinstance(v, int) and v >= 1:
                return int(v)
    except Exception:
        pass
    return 1


def prepare_params(params, input_shape):
    N, Cin, H, W = input_shape
    Hout, Wout = 2 * (H - 1) + 1, 2 * (W - 1) + 1
    P = H * W

    ct_w = np.asarray(params["ct_w"], dtype=np.float64)   # (Cin, Cout, 1, 1)
    ct_b = np.asarray(params["ct_b"], dtype=np.float64)   # (Cout,)
    fc_w = np.asarray(params["fc_w"], dtype=np.float64)   # (Nout, Kfc)
    fc_b = np.asarray(params["fc_b"], dtype=np.float64)   # (Nout,)
    Cout = ct_w.shape[1]
    Nout, Kfc = fc_w.shape
    assert Cout * Hout * Wout >= Kfc, "not enough flattened features for the FC"

    # flat feature f (NCHW flatten of the conv output, truncated to Kfc=768)
    f = np.arange(Kfc)
    c = f // (Hout * Wout)                     # conv output channel
    sp = f % (Hout * Wout)
    h, w = sp // Wout, sp % Wout
    hit = (h % 2 == 0) & (w % 2 == 0)          # positions reached by stride-2 scatter
    pix = (h // 2) * W + (w // 2)              # source input pixel p = h_in*W + w_in

    # Every flat feature carries the conv bias ct_b[c]; fold it into the FC
    # bias (the kernel never adds the conv bias -> no double-add).
    b_eff = fc_b + fc_w @ ct_b[c]              # (Nout,)

    # Hit features carry y[n, pix, c] = sum_cin x[n,cin,pix] * ct_w[cin,c].
    # Fold scatter + flatten + truncation into w_eff, then fold ct_w too, so
    # the whole forward is one GEMM against the NCHW-flattened input:
    #   W_total[cin*P + p, nout] = sum_c ct_w[cin, c] * w_eff[p, c, nout]
    w_eff = np.zeros((P, Cout, Nout), np.float64)
    w_eff[pix[hit], c[hit], :] = fc_w.T[f[hit], :]
    w_total = np.einsum("kc,pcn->kpn", ct_w.reshape(Cin, Cout), w_eff)
    w_total = w_total.reshape(Cin * P, Nout)

    tc = _tensorcores_per_chip()
    n_col_blocks = 2 if (tc >= 2 and Nout % (2 * 128) == 0) else 1

    return {
        # bf16 weight halves the dominant HBM DMA; the dot accumulates in f32.
        "w_total": jnp.asarray(w_total.astype(np.float32), dtype=jnp.bfloat16),
        "b_eff": jnp.asarray(b_eff.astype(np.float32).reshape(1, Nout)),
        "input_shape": tuple(int(d) for d in input_shape),
        "n_col_blocks": n_col_blocks,
    }


# ----------------------------------------------------------------------------
# Pure-JAX reference (original module semantics + the same [:768] bridge)
# ----------------------------------------------------------------------------
def reference_forward(x1, params):
    N, Cin, H, W = x1.shape
    Hout, Wout = 2 * (H - 1) + 1, 2 * (W - 1) + 1
    wm = params["ct_w"].reshape(Cin, -1)                     # (Cin, Cout)
    Cout = wm.shape[1]
    xn = jnp.transpose(x1, (0, 2, 3, 1))                     # NHWC
    y = jnp.einsum("nhwk,kc->nhwc", xn, wm,
                   precision=jax.lax.Precision.HIGHEST)
    v1 = jnp.zeros((N, Hout, Wout, Cout), x1.dtype)
    v1 = v1.at[:, ::2, ::2, :].set(y) + params["ct_b"]
    v1 = jnp.transpose(v1, (0, 3, 1, 2))                     # NCHW
    # TODO(synk): the original module is shape-inconsistent (flatten gives
    # 128*Hout*Wout != 768 features and PyTorch would raise); bridge by taking
    # the first 768 NCHW-flattened features — same convention as the kernel.
    v2 = v1.reshape(N, -1)[:, :768]
    v3 = jnp.dot(v2, params["fc_w"].T,
                 precision=jax.lax.Precision.HIGHEST) + params["fc_b"]
    v6 = jnp.clip(v3 + 3.0, 0.0, 6.0)
    return v3 * v6 / 6.0


def init_params(key):
    k1, k2, k3, k4 = jax.random.split(key, 4)
    return {
        # ConvTranspose2d(64, 128, 1): weight (in=64, out=128, 1, 1), bias (128,)
        "ct_w": jax.random.normal(k1, (64, 128, 1, 1), jnp.float32) * 0.05,
        "ct_b": jax.random.normal(k2, (128,), jnp.float32) * 0.05,
        # Linear(768, 1024): weight (1024, 768), bias (1024,)
        "fc_w": jax.random.normal(k3, (1024, 768), jnp.float32) * 0.02,
        "fc_b": jax.random.normal(k4, (1024,), jnp.float32) * 0.02,
    }


if __name__ == "__main__":
    key = jax.random.PRNGKey(0)
    kx, kp = jax.random.split(key)

    # Small NCHW input: N=2, Cin=64, H=W=2 -> ConvTranspose output (2, 128, 3, 3)
    x1 = jax.random.normal(kx, (2, 64, 2, 2), jnp.float32)
    params = init_params(kp)

    prep = prepare_params(params, x1.shape)          # one-time weight folding
    out = model_forward(x1, prep)
    out = jax.block_until_ready(out)

    ref = reference_forward(x1, params)

    assert out.shape == (2, 1024)
    assert bool(jnp.all(jnp.isfinite(out)))
    np.testing.assert_allclose(np.asarray(out), np.asarray(ref),
                               rtol=5e-3, atol=2e-3)
    print("KERNEL_OK")
</pallas_src>

<mosaic_0001>
module attributes {stable_mosaic.version = 11 : i64} {
  func.func @_fused_fc_hardswish_kernel(%arg0: i32, %arg1: memref<2x256xf32, #tpu.memory_space<vmem>>, %arg2: memref<256x1024xbf16, #tpu.memory_space<vmem>>, %arg3: memref<1x1024xf32, #tpu.memory_space<vmem>>, %arg4: memref<2x1024xf32, #tpu.memory_space<vmem>>) attributes {dimension_semantics = [#tpu.dimension_semantics<parallel>], iteration_bounds = array<i64: 1>, scalar_prefetch = 0 : i64, scratch_operands = 0 : i64, tpu.core_type = #tpu.core_type<tc>, window_params = [{pipeline_mode = #tpu.pipeline_mode<synchronous>, transform_indices = @transform_0, window_bounds = array<i64: 2, 256>}, {transform_indices = @transform_1, window_bounds = array<i64: 256, 1024>}, {transform_indices = @transform_2, window_bounds = array<i64: 1, 1024>}, {transform_indices = @transform_3, window_bounds = array<i64: 2, 1024>}]} {
    %c0 = arith.constant 0 : index
    %c0_0 = arith.constant 0 : index
    %0 = vector.load %arg1[%c0, %c0_0] : memref<2x256xf32, #tpu.memory_space<vmem>>, vector<2x256xf32>
    %1 = arith.truncf %0 : vector<2x256xf32> to vector<2x256xbf16>
    %c0_1 = arith.constant 0 : index
    %c0_2 = arith.constant 0 : index
    %2 = vector.load %arg2[%c0_1, %c0_2] : memref<256x1024xbf16, #tpu.memory_space<vmem>>, vector<256x1024xbf16>
    %cst = arith.constant dense<0.000000e+00> : vector<2x1024xf32>
    %3 = tpu.matmul %1, %2, %cst {dimension_numbers = #tpu.dot_dimension_numbers<[1], [0], [0], [1], [0, 0, 1, 1], [], []>} : vector<2x256xbf16>, vector<256x1024xbf16>, vector<2x1024xf32> -> vector<2x1024xf32>
    %c0_3 = arith.constant 0 : index
    %c0_4 = arith.constant 0 : index
    %4 = vector.load %arg3[%c0_3, %c0_4] : memref<1x1024xf32, #tpu.memory_space<vmem>>, vector<1x1024xf32>
    %5 = vector.broadcast %4 : vector<1x1024xf32> to vector<2x1024xf32>
    %6 = arith.addf %3, %5 : vector<2x1024xf32>
    %cst_5 = arith.constant 3.000000e+00 : f32
    %7 = vector.broadcast %cst_5 : f32 to vector<2x1024xf32>
    %8 = arith.addf %6, %7 : vector<2x1024xf32>
    %cst_6 = arith.constant 0.000000e+00 : f32
    %9 = vector.broadcast %cst_6 : f32 to vector<2x1024xf32>
    %10 = arith.maximumf %8, %9 : vector<2x1024xf32>
    %cst_7 = arith.constant 6.000000e+00 : f32
    %11 = vector.broadcast %cst_7 : f32 to vector<2x1024xf32>
    %12 = arith.minimumf %10, %11 : vector<2x1024xf32>
    %13 = arith.mulf %6, %12 : vector<2x1024xf32>
    %cst_8 = arith.constant 0.166666672 : f32
    %14 = vector.broadcast %cst_8 : f32 to vector<2x1024xf32>
    %15 = arith.mulf %13, %14 : vector<2x1024xf32>
    %c0_9 = arith.constant 0 : index
    %c0_10 = arith.constant 0 : index
    %16 = vector.load %arg4[%c0_9, %c0_10] : memref<2x1024xf32, #tpu.memory_space<vmem>>, vector<2x1024xf32>
    tpu.vector_store %arg4[%c0_9, %c0_10], %15 {strides = array<i32>} : memref<2x1024xf32, #tpu.memory_space<vmem>>, vector<2x1024xf32>,
    return
  }
  func.func @transform_0(%arg0: i32) -> (i32, i32) {
    %c0_i32 = arith.constant 0 : i32
    %c0_i32_0 = arith.constant 0 : i32
    %c0_i32_1 = arith.constant 0 : i32
    return %c0_i32, %c0_i32_0 : i32, i32
  }
  func.func @transform_1(%arg0: i32) -> (i32, i32) {
    %c0_i32 = arith.constant 0 : i32
    %c0_i32_0 = arith.constant 0 : i32
    return %c0_i32, %arg0 : i32, i32
  }
  func.func @transform_2(%arg0: i32) -> (i32, i32) {
    %c0_i32 = arith.constant 0 : i32
    %c0_i32_0 = arith.constant 0 : i32
    return %c0_i32, %arg0 : i32, i32
  }
  func.func @transform_3(%arg0: i32) -> (i32, i32) {
    %c0_i32 = arith.constant 0 : i32
    %c0_i32_0 = arith.constant 0 : i32
    return %c0_i32, %arg0 : i32, i32
  }
}

</mosaic_0001>

<bundles_post_ra>
// kernel: _forward_impl.1
= control target key start
LH: loop header
LB: loop body
LE: loop exit
PB: predicated region body
PF: predicated region fallthrough
CT: control target
= control target key end

     0   :  { %8 = vsyncpa [#allocation3], 0  ;;  %s1886_s0 = inlined_call_operand.vmem [shape: f32[2,256], index: 0, kind: input, shape index: {}]   ;;  %s1887_s1 = inlined_call_operand.hbm [shape: bf16[256,1024], index: 1, kind: input, shape index: {}]   ;;  %s1888_s2 = inlined_call_operand.vmem [shape: f32[1,1024], index: 2, kind: input, shape index: {}]   ;;  %s1889_s3 = inlined_call_operand.hbm [shape: f32[2,1024], index: 3, kind: output, shape index: {}]  }
   0x1   :  { %9 = vsyncpa [#allocation4], 0  ;;  %s16_s14 = sshll.u32 %s1887_s1, 4  ;;  %s1814_s15 = smov [#allocation2]   ;;  %s17_s14 = int_to_ptr.hbm [resolvable:$true] %s16_s14 }
   0x2   :  { %s18_s16 = sshll.u32 %s1814_s15, 4  ;;  %s1815_s17 = smov 512   ;;  %s19_s16 = int_to_ptr.vmem [resolvable:$true] %s18_s16 }
   0x3   :  { %s1816_s18 = smov 32  }
   0x4   :  { %24 = dma.hbm_to_vmem [thread:$0]  %s17_s14, 16384, %s19_s16, [#allocation3], %s1815_s17, %s1815_s17, %s1816_s18  }
   0x5   :  { %1810 = dma.done.wait [#allocation3], 16384  }
   0x6   :  { %1811 = vsyncadd [#allocation3], 4294950912  ;;  %v1344_v0 = vld [vmem:[#allocation2 + $0x1c0] sm:$0xf]  ;;  %v1686_v5 = vld [vmem:[#allocation2 + $0x1c4] sm:$0xf] }
   0x7   :  { %v1690_v1 = vld [vmem:[#allocation2 + $0x1dc] sm:$0xf0]  ;;  %v1346_v6 = vld [vmem:[#allocation2 + $0x1e0] sm:$0xf0]  ;;  %vm1088_vm0 = vcmask 1041408   ;;  %vm1090_vm1 = vcmask 1045508  }
   0x8   :  { %v1600_v2 = vld [vmem:[#allocation2 + $0x3c0] sm:$0xf]  ;;  %v1345_v3 = vor.u32 %v1690_v1, %v1344_v0  ;;  %v1349_v8 = vor.u32 %v1686_v5, %v1346_v6  ;;  %v1750_v9 = vld [vmem:[#allocation2 + $0x3c4] sm:$0xf]  ;;  %vm1092_vm2 = vcmask 1043456   ;;  %s1108_s24 = sshll.u32 %s1889_s3, 4  ;;  %s1109_s24 = int_to_ptr.hbm [resolvable:$true] %s1108_s24 }
   0x9   :  { %v1754_v4 = vld [vmem:[#allocation2 + $0x3dc] sm:$0xf0]  ;;  %v1602_v10 = vld [vmem:[#allocation2 + $0x3e0] sm:$0xf0] }
   0xa   :  { %v1601_v7 = vor.u32 %v1754_v4, %v1600_v2  ;;  %v1312_v11 = vld [vmem:[#allocation2 + $0x180] sm:$0xf]  ;;  %826 = vmatpush.bf16.msra.mxu0 %v1345_v3  ;;  %v1605_v12 = vor.u32 %v1750_v9, %v1602_v10  ;;  %852 = vmatpush.bf16.msra.mxu2 %v1349_v8  ;;  %v1678_v18 = vld [vmem:[#allocation2 + $0x184] sm:$0xf] }
   0xb   :  { %v1682_v13 = vld [vmem:[#allocation2 + $0x19c] sm:$0xf0]  ;;  %v1314_v19 = vld [vmem:[#allocation2 + $0x1a0] sm:$0xf0] }
   0xc   :  { %v1568_v14 = vld [vmem:[#allocation2 + $0x380] sm:$0xf]  ;;  %839 = vmatpush.bf16.msra.mxu1 %v1601_v7  ;;  %v1313_v16 = vor.u32 %v1682_v13, %v1312_v11  ;;  %v1742_v20 = vld [vmem:[#allocation2 + $0x384] sm:$0xf]  ;;  %865 = vmatpush.bf16.msra.mxu3 %v1605_v12  ;;  %v1317_v21 = vor.u32 %v1678_v18, %v1314_v19 }
   0xd   :  { %v1746_v15 = vld [vmem:[#allocation2 + $0x39c] sm:$0xf0]  ;;  %v1570_v22 = vld [vmem:[#allocation2 + $0x3a0] sm:$0xf0] }
   0xe   :  { %v1569_v17 = vor.u32 %v1746_v15, %v1568_v14  ;;  %v1280_v23 = vld [vmem:[#allocation2 + $0x140] sm:$0xf]  ;;  %v1573_v25 = vor.u32 %v1742_v20, %v1570_v22  ;;  %v1670_v28 = vld [vmem:[#allocation2 + $0x144] sm:$0xf]  ;;  %827 = vmatpush.bf16.msra.mxu0 %v1313_v16  ;;  %853 = vmatpush.bf16.msra.mxu2 %v1317_v21 }
   0xf   :  { %v1674_v24 = vld [vmem:[#allocation2 + $0x15c] sm:$0xf0]  ;;  %v1282_v30 = vld [vmem:[#allocation2 + $0x160] sm:$0xf0] }
  0x10   :  { %v1536_v26 = vld [vmem:[#allocation2 + $0x340] sm:$0xf]  ;;  %v1281_v29 = vor.u32 %v1674_v24, %v1280_v23  ;;  %v1734_v31 = vld [vmem:[#allocation2 + $0x344] sm:$0xf]  ;;  %840 = vmatpush.bf16.msra.mxu1 %v1569_v17  ;;  %v1285_v34 = vor.u32 %v1670_v28, %v1282_v30  ;;  %866 = vmatpush.bf16.msra.mxu3 %v1573_v25  ;;  %v1352_v28 = vld [vmem:[#allocation2 + $0x1c8] sm:$0xf] }
  0x11   :  { %v1738_v27 = vld [vmem:[#allocation2 + $0x35c] sm:$0xf0]  ;;  %v1538_v32 = vld [vmem:[#allocation2 + $0x360] sm:$0xf0]  ;;  %v1608_v30 = vld [vmem:[#allocation2 + $0x3c8] sm:$0xf] }
  0x12   :  { %v1537_v33 = vor.u32 %v1738_v27, %v1536_v26  ;;  %v1248_v35 = vld [vmem:[#allocation2 + $0x100] sm:$0xf]  ;;  %v1541_v38 = vor.u32 %v1734_v31, %v1538_v32  ;;  %v1662_v40 = vld [vmem:[#allocation2 + $0x104] sm:$0xf]  ;;  %828 = vmatpush.bf16.msra.mxu0 %v1281_v29  ;;  %854 = vmatpush.bf16.msra.mxu2 %v1285_v34  ;;  %v1691_v29 = vld [vmem:[#allocation2 + $0x1e4] sm:$0xf0] }
  0x13   :  { %v1666_v36 = vld [vmem:[#allocation2 + $0x11c] sm:$0xf0]  ;;  %v1250_v41 = vld [vmem:[#allocation2 + $0x120] sm:$0xf0]  ;;  %v1755_v32 = vld [vmem:[#allocation2 + $0x3e4] sm:$0xf0] }
  0x14   :  { %v1504_v37 = vld [vmem:[#allocation2 + $0x300] sm:$0xf]  ;;  %v1726_v42 = vld [vmem:[#allocation2 + $0x304] sm:$0xf]  ;;  %v1249_v44 = vor.u32 %v1666_v36, %v1248_v35  ;;  %841 = vmatpush.bf16.msra.mxu1 %v1537_v33  ;;  %v1253_v46 = vor.u32 %v1662_v40, %v1250_v41  ;;  %867 = vmatpush.bf16.msra.mxu3 %v1541_v38  ;;  %v1687_v33 = vld [vmem:[#allocation2 + $0x1cc] sm:$0xf]  ;;  %v1353_v40 = vor.u32 %v1691_v29, %v1352_v28 }
  0x15   :  { %v1730_v39 = vld [vmem:[#allocation2 + $0x31c] sm:$0xf0]  ;;  %v1506_v43 = vld [vmem:[#allocation2 + $0x320] sm:$0xf0]  ;;  %v1354_v34 = vld [vmem:[#allocation2 + $0x1e8] sm:$0xf0]  ;;  %v1609_v41 = vor.u32 %v1755_v32, %v1608_v30 }
  0x16   :  { %v1505_v45 = vor.u32 %v1730_v39, %v1504_v37  ;;  %v1216_v47 = vld [vmem:[#allocation2 + $0xc0] sm:$0xf]  ;;  %v1509_v50 = vor.u32 %v1726_v42, %v1506_v43  ;;  %v1654_v52 = vld [vmem:[#allocation2 + $0xc4] sm:$0xf]  ;;  %829 = vmatpush.bf16.msra.mxu0 %v1249_v44  ;;  %855 = vmatpush.bf16.msra.mxu2 %v1253_v46  ;;  %v1751_v37 = vld [vmem:[#allocation2 + $0x3cc] sm:$0xf]  ;;  %v1357_v42 = vor.u32 %v1687_v33, %v1354_v34 }
  0x17   :  { %v1658_v48 = vld [vmem:[#allocation2 + $0xdc] sm:$0xf0]  ;;  %v1218_v53 = vld [vmem:[#allocation2 + $0xe0] sm:$0xf0]  ;;  %v1610_v38 = vld [vmem:[#allocation2 + $0x3e8] sm:$0xf0] }
  0x18   :  { %v1472_v49 = vld [vmem:[#allocation2 + $0x2c0] sm:$0xf]  ;;  %v1718_v54 = vld [vmem:[#allocation2 + $0x2c4] sm:$0xf]  ;;  %v1217_v56 = vor.u32 %v1658_v48, %v1216_v47  ;;  %842 = vmatpush.bf16.msra.mxu1 %v1505_v45  ;;  %v1221_v58 = vor.u32 %v1654_v52, %v1218_v53  ;;  %868 = vmatpush.bf16.msra.mxu3 %v1509_v50  ;;  %v1320_v43 = vld [vmem:[#allocation2 + $0x188] sm:$0xf]  ;;  %v1613_v46 = vor.u32 %v1751_v37, %v1610_v38 }
  0x19   :  { %v1722_v51 = vld [vmem:[#allocation2 + $0x2dc] sm:$0xf0]  ;;  %v1474_v55 = vld [vmem:[#allocation2 + $0x2e0] sm:$0xf0]  ;;  %v1683_v44 = vld [vmem:[#allocation2 + $0x1a4] sm:$0xf0] }
  0x1a   :  { %v1473_v57 = vor.u32 %v1722_v51, %v1472_v49  ;;  %v1184_v59 = vld [vmem:[#allocation2 + $0x80] sm:$0xf]  ;;  %v1477_v62 = vor.u32 %v1718_v54, %v1474_v55  ;;  %v1646_v0 = vld [vmem:[#allocation2 + $0x84] sm:$0xf]  ;;  %830 = vmatpush.bf16.msra.mxu0 %v1217_v56  ;;  %856 = vmatpush.bf16.msra.mxu2 %v1221_v58  ;;  %v1576_v45 = vld [vmem:[#allocation2 + $0x388] sm:$0xf]  ;;  %v1321_v53 = vor.u32 %v1683_v44, %v1320_v43 }
  0x1b   :  { %v1650_v60 = vld [vmem:[#allocation2 + $0x9c] sm:$0xf0]  ;;  %v1186_v1 = vld [vmem:[#allocation2 + $0xa0] sm:$0xf0]  ;;  %v1747_v47 = vld [vmem:[#allocation2 + $0x3a4] sm:$0xf0] }
  0x1c   :  { %v1440_v61 = vld [vmem:[#allocation2 + $0x280] sm:$0xf]  ;;  %v1710_v2 = vld [vmem:[#allocation2 + $0x284] sm:$0xf]  ;;  %v1185_v4 = vor.u32 %v1650_v60, %v1184_v59  ;;  %843 = vmatpush.bf16.msra.mxu1 %v1473_v57  ;;  %v1189_v6 = vor.u32 %v1646_v0, %v1186_v1  ;;  %869 = vmatpush.bf16.msra.mxu3 %v1477_v62  ;;  %v1679_v48 = vld [vmem:[#allocation2 + $0x18c] sm:$0xf]  ;;  %v1577_v54 = vor.u32 %v1747_v47, %v1576_v45 }
  0x1d   :  { %v1714_v63 = vld [vmem:[#allocation2 + $0x29c] sm:$0xf0]  ;;  %v1442_v3 = vld [vmem:[#allocation2 + $0x2a0] sm:$0xf0]  ;;  %v1322_v49 = vld [vmem:[#allocation2 + $0x1a8] sm:$0xf0] }
  0x1e   :  { %v1441_v5 = vor.u32 %v1714_v63, %v1440_v61  ;;  %v1152_v7 = vld [vmem:[#allocation2 + $0x40] sm:$0xf]  ;;  %v1445_v10 = vor.u32 %v1710_v2, %v1442_v3  ;;  %v1638_v12 = vld [vmem:[#allocation2 + $0x44] sm:$0xf]  ;;  %831 = vmatpush.bf16.msra.mxu0 %v1185_v4  ;;  %857 = vmatpush.bf16.msra.mxu2 %v1189_v6  ;;  %v1743_v50 = vld [vmem:[#allocation2 + $0x38c] sm:$0xf]  ;;  %v1325_v55 = vor.u32 %v1679_v48, %v1322_v49 }
  0x1f   :  { %v1642_v8 = vld [vmem:[#allocation2 + $0x5c] sm:$0xf0]  ;;  %v1154_v13 = vld [vmem:[#allocation2 + $0x60] sm:$0xf0]  ;;  %v1578_v51 = vld [vmem:[#allocation2 + $0x3a8] sm:$0xf0] }
  0x20   :  { %v1408_v9 = vld [vmem:[#allocation2 + $0x240] sm:$0xf]  ;;  %v1702_v14 = vld [vmem:[#allocation2 + $0x244] sm:$0xf]  ;;  %v1153_v16 = vor.u32 %v1642_v8, %v1152_v7  ;;  %844 = vmatpush.bf16.msra.mxu1 %v1441_v5  ;;  %v1157_v20 = vor.u32 %v1638_v12, %v1154_v13  ;;  %870 = vmatpush.bf16.msra.mxu3 %v1445_v10  ;;  %v31_v52 = vld [vmem:[%s1886_s0] sm:$0xf]  ;;  %v1581_v59 = vor.u32 %v1743_v50, %v1578_v51 }
  0x21   :  { %v1706_v11 = vld [vmem:[#allocation2 + $0x25c] sm:$0xf0]  ;;  %v1410_v15 = vld [vmem:[#allocation2 + $0x260] sm:$0xf0]  ;;  %33 = vst [vmem:[#allocation1] ss:$4 sm:$0xff] %v31_v52 }
  0x22   :  { %v1120_v17 = vld [vmem:[#allocation2] sm:$0xf]  ;;  %v1409_v19 = vor.u32 %v1706_v11, %v1408_v9  ;;  %v1630_v23 = vld [vmem:[#allocation2 + $0x4] sm:$0xf]  ;;  %v1413_v24 = vor.u32 %v1702_v14, %v1410_v15  ;;  %832 = vmatpush.bf16.msra.mxu0 %v1153_v16  ;;  %858 = vmatpush.bf16.msra.mxu2 %v1157_v20  ;;  %v1288_v56 = vld [vmem:[#allocation2 + $0x148] sm:$0xf] }
  0x23   :  { %v1634_v18 = vld [vmem:[#allocation2 + $0x1c] sm:$0xf0]  ;;  %v1122_v25 = vld [vmem:[#allocation2 + $0x20] sm:$0xf0]  ;;  %v1675_v57 = vld [vmem:[#allocation2 + $0x164] sm:$0xf0] }
  0x24   :  { %v1376_v21 = vld [vmem:[#allocation2 + $0x200] sm:$0xf]  ;;  %v1694_v26 = vld [vmem:[#allocation2 + $0x204] sm:$0xf]  ;;  %v1121_v31 = vor.u32 %v1634_v18, %v1120_v17  ;;  %845 = vmatpush.bf16.msra.mxu1 %v1409_v19  ;;  %v1125_v36 = vor.u32 %v1630_v23, %v1122_v25  ;;  %871 = vmatpush.bf16.msra.mxu3 %v1413_v24  ;;  %v1544_v58 = vld [vmem:[#allocation2 + $0x348] sm:$0xf]  ;;  %v1289_v1 = vor.u32 %v1675_v57, %v1288_v56 }
  0x25   :  { %v1698_v22 = vld [vmem:[#allocation2 + $0x21c] sm:$0xf0]  ;;  %v1378_v27 = vld [vmem:[#allocation2 + $0x220] sm:$0xf0]  ;;  %v1739_v60 = vld [vmem:[#allocation2 + $0x364] sm:$0xf0] }
  0x26   :  { %v1377_v35 = vor.u32 %v1698_v22, %v1376_v21  ;;  %v1381_v39 = vor.u32 %v1694_v26, %v1378_v27  ;;  %833 = vmatpush.bf16.msra.mxu0 %v1121_v31  ;;  %859 = vmatpush.bf16.msra.mxu2 %v1125_v36  ;;  %v1671_v61 = vld [vmem:[#allocation2 + $0x14c] sm:$0xf]  ;;  %v1256_v2 = vld [vmem:[#allocation2 + $0x108] sm:$0xf]  ;;  %v1545_v4 = vor.u32 %v1739_v60, %v1544_v58 }
  0x27   :  { %v1290_v62 = vld [vmem:[#allocation2 + $0x168] sm:$0xf0]  ;;  %v1667_v3 = vld [vmem:[#allocation2 + $0x124] sm:$0xf0] }
  0x28   :  { %846 = vmatpush.bf16.msra.mxu1 %v1377_v35  ;;  %872 = vmatpush.bf16.msra.mxu3 %v1381_v39  ;;  %v1735_v63 = vld [vmem:[#allocation2 + $0x34c] sm:$0xf]  ;;  %v1293_v5 = vor.u32 %v1671_v61, %v1290_v62  ;;  %v1512_v6 = vld [vmem:[#allocation2 + $0x308] sm:$0xf]  ;;  %v1257_v15 = vor.u32 %v1667_v3, %v1256_v2  ;;  %v1692_v2 = vld [vmem:[#allocation2 + $0x1ec] sm:$0xf0] }
  0x29   :  { %v1546_v0 = vld [vmem:[#allocation2 + $0x368] sm:$0xf0]  ;;  %v1731_v7 = vld [vmem:[#allocation2 + $0x324] sm:$0xf0]  ;;  %v1616_v3 = vld [vmem:[#allocation2 + $0x3d0] sm:$0xf] }
  0x2a   :  { %878 = vmatpush.bf16.msrb.mxu0 %v1353_v40  ;;  %904 = vmatpush.bf16.msrb.mxu2 %v1357_v42  ;;  %v1663_v8 = vld [vmem:[#allocation2 + $0x10c] sm:$0xf]  ;;  %v1549_v9 = vor.u32 %v1735_v63, %v1546_v0  ;;  %v34_v13 = vld.sshfl [vmem:[#allocation1] sm:$0xff pattern:$0x73625140]  ;;  %v1513_v18 = vor.u32 %v1731_v7, %v1512_v6 }
  0x2b   :  { %v1258_v10 = vld [vmem:[#allocation2 + $0x128] sm:$0xf0]  ;;  %v35_v14 = vld.sshfl [vmem:[#allocation1 + $0x8] sm:$0xff pattern:$0x73625140]  ;;  %v1844_v16 = vpack.c.bf16 %v34_v13, %v34_v13 }
  0x2c   :  { %891 = vmatpush.bf16.msrb.mxu1 %v1609_v41  ;;  %917 = vmatpush.bf16.msrb.mxu3 %v1613_v46  ;;  %v1727_v11 = vld [vmem:[#allocation2 + $0x30c] sm:$0xf]  ;;  %v1846_v17 = vpack.c.bf16 %v35_v14, %v35_v14  ;;  %v1261_v19 = vor.u32 %v1663_v8, %v1258_v10  ;;  %v1224_v20 = vld [vmem:[#allocation2 + $0xc8] sm:$0xf]  ;;  %v1688_v6 = vld [vmem:[#allocation2 + $0x1d4] sm:$0xf] }
  0x2d   :  { %v1514_v12 = vld [vmem:[#allocation2 + $0x328] sm:$0xf0]  ;;  %v1659_v21 = vld [vmem:[#allocation2 + $0xe4] sm:$0xf0]  ;;  %860 = vmatmul.bf16.vlgmr.msra.gmra.mxu2 %v1844_v16  ;;  %834 = vmatmul.bf16.vlgmr.msra.gmra.mxu0 %v1844_v16  ;;  %v1362_v7 = vld [vmem:[#allocation2 + $0x1f0] sm:$0xf0] }
  0x2e   :  { %879 = vmatpush.bf16.msrb.mxu0 %v1321_v53  ;;  %905 = vmatpush.bf16.msrb.mxu2 %v1325_v55  ;;  %v1480_v22 = vld [vmem:[#allocation2 + $0x2c8] sm:$0xf]  ;;  %v1517_v23 = vor.u32 %v1727_v11, %v1514_v12  ;;  %v1655_v25 = vld [vmem:[#allocation2 + $0xcc] sm:$0xf]  ;;  %v1225_v29 = vor.u32 %v1659_v21, %v1224_v20  ;;  %v1752_v10 = vld [vmem:[#allocation2 + $0x3d4] sm:$0xf] }
  0x2f   :  { %v1723_v24 = vld [vmem:[#allocation2 + $0x2e4] sm:$0xf0]  ;;  %v1226_v26 = vld [vmem:[#allocation2 + $0xe8] sm:$0xf0]  ;;  %873 = vmatmul.bf16.vlgmr.msra.gmra.mxu3 %v1846_v17  ;;  %847 = vmatmul.bf16.vlgmr.msra.gmra.mxu1 %v1846_v17  ;;  %v1618_v11 = vld [vmem:[#allocation2 + $0x3f0] sm:$0xf0] }
  0x30   :  { %892 = vmatpush.bf16.msrb.mxu1 %v1577_v54  ;;  %918 = vmatpush.bf16.msrb.mxu3 %v1581_v59  ;;  %v1719_v27 = vld [vmem:[#allocation2 + $0x2cc] sm:$0xf]  ;;  %v1481_v30 = vor.u32 %v1723_v24, %v1480_v22  ;;  %v1229_v31 = vor.u32 %v1655_v25, %v1226_v26  ;;  %v1192_v32 = vld [vmem:[#allocation2 + $0x88] sm:$0xf]  ;;  %v1584_v20 = vld [vmem:[#allocation2 + $0x390] sm:$0xf]  ;;  %v1621_v21 = vor.u32 %v1752_v10, %v1618_v11 }
  0x31   :  { %v1482_v28 = vld [vmem:[#allocation2 + $0x2e8] sm:$0xf0]  ;;  %v1651_v33 = vld [vmem:[#allocation2 + $0xa4] sm:$0xf0]  ;;  %v1748_v22 = vld [vmem:[#allocation2 + $0x3ac] sm:$0xf0] }
  0x32   :  { %880 = vmatpush.bf16.msrb.mxu0 %v1289_v1  ;;  %906 = vmatpush.bf16.msrb.mxu2 %v1293_v5  ;;  %v1448_v34 = vld [vmem:[#allocation2 + $0x288] sm:$0xf]  ;;  %v1485_v35 = vor.u32 %v1719_v27, %v1482_v28  ;;  %v1647_v37 = vld [vmem:[#allocation2 + $0x8c] sm:$0xf]  ;;  %v1193_v41 = vor.u32 %v1651_v33, %v1192_v32  ;;  %v1360_v1 = vld [vmem:[#allocation2 + $0x1d0] sm:$0xf]  ;;  %v1585_v28 = vor.u32 %v1748_v22, %v1584_v20 }
  0x33   :  { %v1715_v36 = vld [vmem:[#allocation2 + $0x2a4] sm:$0xf0]  ;;  %v1194_v38 = vld [vmem:[#allocation2 + $0xa8] sm:$0xf0]  ;;  %v1756_v5 = vld [vmem:[#allocation2 + $0x3ec] sm:$0xf0]  ;;  %v1361_v13 = vor.u32 %v1692_v2, %v1360_v1 }
  0x34   :  { %893 = vmatpush.bf16.msrb.mxu1 %v1545_v4  ;;  %919 = vmatpush.bf16.msrb.mxu3 %v1549_v9  ;;  %v1711_v39 = vld [vmem:[#allocation2 + $0x28c] sm:$0xf]  ;;  %v1449_v42 = vor.u32 %v1715_v36, %v1448_v34  ;;  %v1197_v43 = vor.u32 %v1647_v37, %v1194_v38  ;;  %v1160_v44 = vld [vmem:[#allocation2 + $0x48] sm:$0xf]  ;;  %v1617_v14 = vor.u32 %v1756_v5, %v1616_v3  ;;  %v1330_v24 = vld [vmem:[#allocation2 + $0x1b0] sm:$0xf0] }
  0x35   :  { %v1450_v40 = vld [vmem:[#allocation2 + $0x2a8] sm:$0xf0]  ;;  %v1643_v45 = vld [vmem:[#allocation2 + $0x64] sm:$0xf0]  ;;  %v1744_v25 = vld [vmem:[#allocation2 + $0x394] sm:$0xf] }
  0x36   :  { %881 = vmatpush.bf16.msrb.mxu0 %v1257_v15  ;;  %907 = vmatpush.bf16.msrb.mxu2 %v1261_v19  ;;  %v1416_v46 = vld [vmem:[#allocation2 + $0x248] sm:$0xf]  ;;  %v1453_v47 = vor.u32 %v1711_v39, %v1450_v40  ;;  %v1639_v49 = vld [vmem:[#allocation2 + $0x4c] sm:$0xf]  ;;  %v1161_v53 = vor.u32 %v1643_v45, %v1160_v44  ;;  %v1365_v15 = vor.u32 %v1688_v6, %v1362_v7  ;;  %v1684_v19 = vld [vmem:[#allocation2 + $0x1ac] sm:$0xf0] }
  0x37   :  { %v1707_v48 = vld [vmem:[#allocation2 + $0x264] sm:$0xf0]  ;;  %v1162_v50 = vld [vmem:[#allocation2 + $0x68] sm:$0xf0]  ;;  %v1586_v26 = vld [vmem:[#allocation2 + $0x3b0] sm:$0xf0] }
  0x38   :  { %894 = vmatpush.bf16.msrb.mxu1 %v1513_v18  ;;  %920 = vmatpush.bf16.msrb.mxu3 %v1517_v23  ;;  %v1703_v51 = vld [vmem:[#allocation2 + $0x24c] sm:$0xf]  ;;  %v1128_v54 = vld [vmem:[#allocation2 + $0x8] sm:$0xf]  ;;  %v1417_v56 = vor.u32 %v1707_v48, %v1416_v46  ;;  %v1165_v57 = vor.u32 %v1639_v49, %v1162_v50  ;;  %v1328_v18 = vld [vmem:[#allocation2 + $0x190] sm:$0xf]  ;;  %v1589_v33 = vor.u32 %v1744_v25, %v1586_v26 }
  0x39   :  { %v1418_v52 = vld [vmem:[#allocation2 + $0x268] sm:$0xf0]  ;;  %v1635_v55 = vld [vmem:[#allocation2 + $0x24] sm:$0xf0]  ;;  %v1680_v23 = vld [vmem:[#allocation2 + $0x194] sm:$0xf]  ;;  %v1329_v27 = vor.u32 %v1684_v19, %v1328_v18 }
  0x3a   :  { %882 = vmatpush.bf16.msrb.mxu0 %v1225_v29  ;;  %908 = vmatpush.bf16.msrb.mxu2 %v1229_v31  ;;  %v1384_v58 = vld [vmem:[#allocation2 + $0x208] sm:$0xf]  ;;  %v1631_v60 = vld [vmem:[#allocation2 + $0xc] sm:$0xf]  ;;  %v1421_v61 = vor.u32 %v1703_v51, %v1418_v52  ;;  %v1129_v4 = vor.u32 %v1635_v55, %v1128_v54  ;;  %v1333_v29 = vor.u32 %v1680_v23, %v1330_v24  ;;  %v1676_v31 = vld [vmem:[#allocation2 + $0x16c] sm:$0xf0] }
  0x3b   :  { %v1699_v59 = vld [vmem:[#allocation2 + $0x224] sm:$0xf0]  ;;  %v1130_v62 = vld [vmem:[#allocation2 + $0x28] sm:$0xf0]  ;;  %v1552_v32 = vld [vmem:[#allocation2 + $0x350] sm:$0xf] }
  0x3c   :  { %895 = vmatpush.bf16.msrb.mxu1 %v1481_v30  ;;  %921 = vmatpush.bf16.msrb.mxu3 %v1485_v35  ;;  %v1695_v63 = vld [vmem:[#allocation2 + $0x20c] sm:$0xf]  ;;  %v1385_v8 = vor.u32 %v1699_v59, %v1384_v58  ;;  %v1133_v9 = vor.u32 %v1631_v60, %v1130_v62  ;;  %v1296_v30 = vld [vmem:[#allocation2 + $0x150] sm:$0xf]  ;;  %v1672_v35 = vld [vmem:[#allocation2 + $0x154] sm:$0xf] }
  0x3d   :  { %v1386_v0 = vld [vmem:[#allocation2 + $0x228] sm:$0xf0]  ;;  %v1740_v34 = vld [vmem:[#allocation2 + $0x36c] sm:$0xf0]  ;;  %v1298_v36 = vld [vmem:[#allocation2 + $0x170] sm:$0xf0]  ;;  %v1297_v39 = vor.u32 %v1676_v31, %v1296_v30 }
  0x3e   :  { %883 = vmatpush.bf16.msrb.mxu0 %v1193_v41  ;;  %909 = vmatpush.bf16.msrb.mxu2 %v1197_v43  ;;  %v1389_v12 = vor.u32 %v1695_v63, %v1386_v0  ;;  %v1736_v37 = vld [vmem:[#allocation2 + $0x354] sm:$0xf]  ;;  %v1553_v40 = vor.u32 %v1740_v34, %v1552_v32  ;;  %v1301_v41 = vor.u32 %v1672_v35, %v1298_v36  ;;  %v1668_v43 = vld [vmem:[#allocation2 + $0x12c] sm:$0xf0] }
  0x3f   :  { %v1554_v38 = vld [vmem:[#allocation2 + $0x370] sm:$0xf0]  ;;  %v1520_v44 = vld [vmem:[#allocation2 + $0x310] sm:$0xf] }
  0x40   :  { %896 = vmatpush.bf16.msrb.mxu1 %v1449_v42  ;;  %922 = vmatpush.bf16.msrb.mxu3 %v1453_v47  ;;  %v1264_v42 = vld [vmem:[#allocation2 + $0x110] sm:$0xf]  ;;  %v1557_v45 = vor.u32 %v1736_v37, %v1554_v38  ;;  %v1664_v47 = vld [vmem:[#allocation2 + $0x114] sm:$0xf]  ;;  %v1368_v37 = vld [vmem:[#allocation2 + $0x1d8] sm:$0xf] }
  0x41   :  { %v1732_v46 = vld [vmem:[#allocation2 + $0x32c] sm:$0xf0]  ;;  %v1266_v48 = vld [vmem:[#allocation2 + $0x130] sm:$0xf0]  ;;  %v1265_v51 = vor.u32 %v1668_v43, %v1264_v42  ;;  %v1693_v38 = vld [vmem:[#allocation2 + $0x1f4] sm:$0xf0] }
  0x42   :  { %884 = vmatpush.bf16.msrb.mxu0 %v1161_v53  ;;  %910 = vmatpush.bf16.msrb.mxu2 %v1165_v57  ;;  %v1728_v49 = vld [vmem:[#allocation2 + $0x314] sm:$0xf]  ;;  %v1521_v52 = vor.u32 %v1732_v46, %v1520_v44  ;;  %v1269_v53 = vor.u32 %v1664_v47, %v1266_v48  ;;  %v1232_v54 = vld [vmem:[#allocation2 + $0xd0] sm:$0xf]  ;;  %v1689_v42 = vld [vmem:[#allocation2 + $0x1dc] sm:$0xf] }
  0x43   :  { %v1522_v50 = vld [vmem:[#allocation2 + $0x330] sm:$0xf0]  ;;  %v1660_v55 = vld [vmem:[#allocation2 + $0xec] sm:$0xf0]  ;;  %v1370_v43 = vld [vmem:[#allocation2 + $0x1f8] sm:$0xf0] }
  0x44   :  { %897 = vmatpush.bf16.msrb.mxu1 %v1417_v56  ;;  %923 = vmatpush.bf16.msrb.mxu3 %v1421_v61  ;;  %v1488_v56 = vld [vmem:[#allocation2 + $0x2d0] sm:$0xf]  ;;  %v1525_v57 = vor.u32 %v1728_v49, %v1522_v50  ;;  %v1656_v59 = vld [vmem:[#allocation2 + $0xd4] sm:$0xf]  ;;  %v1233_v63 = vor.u32 %v1660_v55, %v1232_v54  ;;  %v1753_v46 = vld [vmem:[#allocation2 + $0x3dc] sm:$0xf]  ;;  %v1369_v49 = vor.u32 %v1693_v38, %v1368_v37 }
  0x45   :  { %v1724_v58 = vld [vmem:[#allocation2 + $0x2ec] sm:$0xf0]  ;;  %v1234_v60 = vld [vmem:[#allocation2 + $0xf0] sm:$0xf0]  ;;  %v1626_v47 = vld [vmem:[#allocation2 + $0x3f8] sm:$0xf0] }
  0x46   :  { %885 = vmatpush.bf16.msrb.mxu0 %v1129_v4  ;;  %911 = vmatpush.bf16.msrb.mxu2 %v1133_v9  ;;  %v1720_v61 = vld [vmem:[#allocation2 + $0x2d4] sm:$0xf]  ;;  %v1489_v0 = vor.u32 %v1724_v58, %v1488_v56  ;;  %v1237_v1 = vor.u32 %v1656_v59, %v1234_v60  ;;  %v1200_v2 = vld [vmem:[#allocation2 + $0x90] sm:$0xf]  ;;  %v1592_v54 = vld [vmem:[#allocation2 + $0x398] sm:$0xf]  ;;  %v1629_v55 = vor.u32 %v1753_v46, %v1626_v47 }
  0x47   :  { %v1490_v62 = vld [vmem:[#allocation2 + $0x2f0] sm:$0xf0]  ;;  %v1652_v3 = vld [vmem:[#allocation2 + $0xac] sm:$0xf0]  ;;  %v1749_v56 = vld [vmem:[#allocation2 + $0x3b4] sm:$0xf0] }
  0x48   :  { %898 = vmatpush.bf16.msrb.mxu1 %v1385_v8  ;;  %924 = vmatpush.bf16.msrb.mxu3 %v1389_v12  ;;  %v1456_v4 = vld [vmem:[#allocation2 + $0x290] sm:$0xf]  ;;  %v1493_v5 = vor.u32 %v1720_v61, %v1490_v62  ;;  %v1648_v7 = vld [vmem:[#allocation2 + $0x94] sm:$0xf]  ;;  %v1201_v11 = vor.u32 %v1652_v3, %v1200_v2  ;;  %v1338_v58 = vld [vmem:[#allocation2 + $0x1b8] sm:$0xf0]  ;;  %v1593_v62 = vor.u32 %v1749_v56, %v1592_v54 }
  0x49   :  { %912 = vmatmul.bf16.vlgmr.msrb.gmra.mxu2 %v1844_v16  ;;  %886 = vmatmul.bf16.vlgmr.msrb.gmra.mxu0 %v1844_v16  ;;  %v1716_v6 = vld [vmem:[#allocation2 + $0x2ac] sm:$0xf0]  ;;  %v1202_v8 = vld [vmem:[#allocation2 + $0xb0] sm:$0xf0]  ;;  %v1745_v59 = vld [vmem:[#allocation2 + $0x39c] sm:$0xf] }
  0x4a   :  { %930 = vmatpush.bf16.msra.mxu0 %v1361_v13  ;;  %956 = vmatpush.bf16.msra.mxu2 %v1365_v15  ;;  %v1712_v9 = vld [vmem:[#allocation2 + $0x294] sm:$0xf]  ;;  %v1457_v12 = vor.u32 %v1716_v6, %v1456_v4  ;;  %v1205_v13 = vor.u32 %v1648_v7, %v1202_v8  ;;  %v1644_v15 = vld [vmem:[#allocation2 + $0x6c] sm:$0xf0]  ;;  %v1594_v60 = vld [vmem:[#allocation2 + $0x3b8] sm:$0xf0] }
  0x4b   :  { %925 = vmatmul.bf16.vlgmr.msrb.gmra.mxu3 %v1846_v17  ;;  %899 = vmatmul.bf16.vlgmr.msrb.gmra.mxu1 %v1846_v17  ;;  %v1458_v10 = vld [vmem:[#allocation2 + $0x2b0] sm:$0xf0]  ;;  %v1424_v18 = vld [vmem:[#allocation2 + $0x250] sm:$0xf]  ;;  %v1560_v2 = vld [vmem:[#allocation2 + $0x358] sm:$0xf]  ;;  %v1597_v3 = vor.u32 %v1745_v59, %v1594_v60 }
  0x4c   :  { %943 = vmatpush.bf16.msra.mxu1 %v1617_v14  ;;  %969 = vmatpush.bf16.msra.mxu3 %v1621_v21  ;;  %v1168_v14 = vld [vmem:[#allocation2 + $0x50] sm:$0xf]  ;;  %v1461_v19 = vor.u32 %v1712_v9, %v1458_v10  ;;  %v1640_v21 = vld [vmem:[#allocation2 + $0x54] sm:$0xf]  ;;  %v1741_v4 = vld [vmem:[#allocation2 + $0x374] sm:$0xf0] }
  0x4d   :  { %v1708_v20 = vld [vmem:[#allocation2 + $0x26c] sm:$0xf0]  ;;  %v1170_v22 = vld [vmem:[#allocation2 + $0x70] sm:$0xf0]  ;;  %v1169_v25 = vor.u32 %v1644_v15, %v1168_v14  ;;  %v1306_v6 = vld [vmem:[#allocation2 + $0x178] sm:$0xf0]  ;;  %v1561_v10 = vor.u32 %v1741_v4, %v1560_v2 }
  0x4e   :  { %931 = vmatpush.bf16.msra.mxu0 %v1329_v27  ;;  %957 = vmatpush.bf16.msra.mxu2 %v1333_v29  ;;  %v1704_v23 = vld [vmem:[#allocation2 + $0x254] sm:$0xf]  ;;  %v1136_v26 = vld [vmem:[#allocation2 + $0x10] sm:$0xf]  ;;  %v1173_v29 = vor.u32 %v1640_v21, %v1170_v22  ;;  %v1737_v7 = vld [vmem:[#allocation2 + $0x35c] sm:$0xf] }
  0x4f   :  { %v1426_v24 = vld [vmem:[#allocation2 + $0x270] sm:$0xf0]  ;;  %v1636_v27 = vld [vmem:[#allocation2 + $0x2c] sm:$0xf0]  ;;  %v1562_v8 = vld [vmem:[#allocation2 + $0x378] sm:$0xf0] }
  0x50   :  { %944 = vmatpush.bf16.msra.mxu1 %v1585_v28  ;;  %970 = vmatpush.bf16.msra.mxu3 %v1589_v33  ;;  %v1425_v28 = vor.u32 %v1708_v20, %v1424_v18  ;;  %v1392_v30 = vld [vmem:[#allocation2 + $0x210] sm:$0xf]  ;;  %v1632_v32 = vld [vmem:[#allocation2 + $0x14] sm:$0xf]  ;;  %v1429_v33 = vor.u32 %v1704_v23, %v1426_v24  ;;  %v1528_v14 = vld [vmem:[#allocation2 + $0x318] sm:$0xf]  ;;  %v1565_v15 = vor.u32 %v1737_v7, %v1562_v8 }
  0x51   :  { %v1700_v31 = vld [vmem:[#allocation2 + $0x22c] sm:$0xf0]  ;;  %v1138_v34 = vld [vmem:[#allocation2 + $0x30] sm:$0xf0]  ;;  %v1733_v18 = vld [vmem:[#allocation2 + $0x334] sm:$0xf0] }
  0x52   :  { %932 = vmatpush.bf16.msra.mxu0 %v1297_v39  ;;  %958 = vmatpush.bf16.msra.mxu2 %v1301_v41  ;;  %v1696_v35 = vld [vmem:[#allocation2 + $0x214] sm:$0xf]  ;;  %v1624_v39 = vld [vmem:[#allocation2 + $0x3d8] sm:$0xf]  ;;  %v1393_v44 = vor.u32 %v1700_v31, %v1392_v30  ;;  %v1274_v20 = vld [vmem:[#allocation2 + $0x138] sm:$0xf0]  ;;  %v1529_v24 = vor.u32 %v1733_v18, %v1528_v14 }
  0x53   :  { %v1394_v36 = vld [vmem:[#allocation2 + $0x230] sm:$0xf0]  ;;  %v1757_v41 = vld [vmem:[#allocation2 + $0x3f4] sm:$0xf0]  ;;  %v1729_v21 = vld [vmem:[#allocation2 + $0x31c] sm:$0xf] }
  0x54   :  { %945 = vmatpush.bf16.msra.mxu1 %v1553_v40  ;;  %971 = vmatpush.bf16.msra.mxu3 %v1557_v45  ;;  %v1137_v40 = vor.u32 %v1636_v27, %v1136_v26  ;;  %v1141_v45 = vor.u32 %v1632_v32, %v1138_v34  ;;  %v1397_v48 = vor.u32 %v1696_v35, %v1394_v36  ;;  %v1530_v22 = vld [vmem:[#allocation2 + $0x338] sm:$0xf0]  ;;  %v1240_v26 = vld [vmem:[#allocation2 + $0xd8] sm:$0xf] }
  0x55   :  { %v1625_v50 = vor.u32 %v1757_v41, %v1624_v39  ;;  %v1661_v27 = vld [vmem:[#allocation2 + $0xf4] sm:$0xf0]  ;;  %v1657_v31 = vld [vmem:[#allocation2 + $0xdc] sm:$0xf] }
  0x56   :  { %933 = vmatpush.bf16.msra.mxu0 %v1265_v51  ;;  %959 = vmatpush.bf16.msra.mxu2 %v1269_v53  ;;  %v1373_v51 = vor.u32 %v1689_v42, %v1370_v43  ;;  %v1685_v53 = vld [vmem:[#allocation2 + $0x1b4] sm:$0xf0]  ;;  %v1242_v32 = vld [vmem:[#allocation2 + $0xf8] sm:$0xf0]  ;;  %v1241_v35 = vor.u32 %v1661_v27, %v1240_v26 }
  0x57   :  { %v1725_v30 = vld [vmem:[#allocation2 + $0x2f4] sm:$0xf0]  ;;  %v1498_v34 = vld [vmem:[#allocation2 + $0x2f8] sm:$0xf0]  ;;  %v1245_v37 = vor.u32 %v1657_v31, %v1242_v32 }
  0x58   :  { %946 = vmatpush.bf16.msra.mxu1 %v1521_v52  ;;  %972 = vmatpush.bf16.msra.mxu3 %v1525_v57  ;;  %v1336_v52 = vld [vmem:[#allocation2 + $0x198] sm:$0xf]  ;;  %v1681_v57 = vld [vmem:[#allocation2 + $0x19c] sm:$0xf] }
  0x59   :  { %v1337_v61 = vor.u32 %v1685_v53, %v1336_v52  ;;  %v1208_v38 = vld [vmem:[#allocation2 + $0x98] sm:$0xf]  ;;  %v1649_v43 = vld [vmem:[#allocation2 + $0x9c] sm:$0xf] }
  0x5a   :  { %934 = vmatpush.bf16.msra.mxu0 %v1233_v63  ;;  %960 = vmatpush.bf16.msra.mxu2 %v1237_v1  ;;  %v1341_v63 = vor.u32 %v1681_v57, %v1338_v58  ;;  %v1677_v1 = vld [vmem:[#allocation2 + $0x174] sm:$0xf0]  ;;  %v1466_v46 = vld [vmem:[#allocation2 + $0x2b8] sm:$0xf0] }
  0x5b   :  { %v1653_v39 = vld [vmem:[#allocation2 + $0xb4] sm:$0xf0]  ;;  %v1178_v56 = vld [vmem:[#allocation2 + $0x78] sm:$0xf0] }
  0x5c   :  { %947 = vmatpush.bf16.msra.mxu1 %v1489_v0  ;;  %973 = vmatpush.bf16.msra.mxu3 %v1493_v5  ;;  %v1304_v0 = vld [vmem:[#allocation2 + $0x158] sm:$0xf]  ;;  %v1673_v5 = vld [vmem:[#allocation2 + $0x15c] sm:$0xf]  ;;  %v1209_v47 = vor.u32 %v1653_v39, %v1208_v38 }
  0x5d   :  { %v1305_v9 = vor.u32 %v1677_v1, %v1304_v0  ;;  %v1717_v42 = vld [vmem:[#allocation2 + $0x2b4] sm:$0xf0]  ;;  %v1705_v57 = vld [vmem:[#allocation2 + $0x25c] sm:$0xf] }
  0x5e   :  { %935 = vmatpush.bf16.msra.mxu0 %v1201_v11  ;;  %961 = vmatpush.bf16.msra.mxu2 %v1205_v13  ;;  %v1309_v11 = vor.u32 %v1673_v5, %v1306_v6  ;;  %v1669_v13 = vld [vmem:[#allocation2 + $0x134] sm:$0xf0]  ;;  %v1434_v58 = vld [vmem:[#allocation2 + $0x278] sm:$0xf0] }
  0x5f   :  { %v1432_v52 = vld [vmem:[#allocation2 + $0x258] sm:$0xf]  ;;  %v1437_v1 = vor.u32 %v1705_v57, %v1434_v58  ;;  %v1146_v4 = vld [vmem:[#allocation2 + $0x38] sm:$0xf0] }
  0x60   :  { %948 = vmatpush.bf16.msra.mxu1 %v1457_v12  ;;  %974 = vmatpush.bf16.msra.mxu3 %v1461_v19  ;;  %v1272_v12 = vld [vmem:[#allocation2 + $0x118] sm:$0xf]  ;;  %v1665_v19 = vld [vmem:[#allocation2 + $0x11c] sm:$0xf] }
  0x61   :  { %v1273_v23 = vor.u32 %v1669_v13, %v1272_v12  ;;  %v1709_v54 = vld [vmem:[#allocation2 + $0x274] sm:$0xf0]  ;;  %v1697_v5 = vld [vmem:[#allocation2 + $0x21c] sm:$0xf] }
  0x62   :  { %936 = vmatpush.bf16.msra.mxu0 %v1169_v25  ;;  %962 = vmatpush.bf16.msra.mxu2 %v1173_v29  ;;  %v1277_v25 = vor.u32 %v1665_v19, %v1274_v20  ;;  %v1533_v29 = vor.u32 %v1729_v21, %v1530_v22  ;;  %v1433_v60 = vor.u32 %v1709_v54, %v1432_v52  ;;  %v1400_v0 = vld [vmem:[#allocation2 + $0x218] sm:$0xf]  ;;  %v1402_v6 = vld [vmem:[#allocation2 + $0x238] sm:$0xf0] }
  0x63   :  { %v1701_v2 = vld [vmem:[#allocation2 + $0x234] sm:$0xf0] }
  0x64   :  { %949 = vmatpush.bf16.msra.mxu1 %v1425_v28  ;;  %975 = vmatpush.bf16.msra.mxu3 %v1429_v33  ;;  %v1496_v28 = vld [vmem:[#allocation2 + $0x2d8] sm:$0xf]  ;;  %v1721_v33 = vld [vmem:[#allocation2 + $0x2dc] sm:$0xf]  ;;  %v1401_v8 = vor.u32 %v1701_v2, %v1400_v0 }
  0x65   :  { %v1497_v36 = vor.u32 %v1725_v30, %v1496_v28  ;;  %v1501_v41 = vor.u32 %v1721_v33, %v1498_v34  ;;  %v1867_v13 = vld [vmem:[%s1888_s2] sm:$0xff]  ;;  %s1817_s2 = smov [#allocation5]  }
  0x66   :  { %937 = vmatpush.bf16.msra.mxu0 %v1137_v40  ;;  %963 = vmatpush.bf16.msra.mxu2 %v1141_v45  ;;  %v1464_v40 = vld [vmem:[#allocation2 + $0x298] sm:$0xf]  ;;  %v1713_v45 = vld [vmem:[#allocation2 + $0x29c] sm:$0xf]  ;;  %v171_v18 = vperm.slane %v1867_v13, 1  ;;  %v170_v21 = vperm.slane %v1867_v13, 0 }
  0x67   :  { %v1469_v53 = vor.u32 %v1713_v45, %v1466_v46  ;;  %v173_v33 = vperm.slane %v1867_v13, 3  ;;  %s1106_s21 = sshll.u32 %s1817_s2, 4  ;;  %s1107_s21 = int_to_ptr.vmem [resolvable:$true] %s1106_s21 }
  0x68   :  { %950 = vmatpush.bf16.msra.mxu1 %v1393_v44  ;;  %976 = vmatpush.bf16.msra.mxu3 %v1397_v48  ;;  %v1210_v44 = vld [vmem:[#allocation2 + $0xb8] sm:$0xf0]  ;;  %v1465_v48 = vor.u32 %v1717_v42, %v1464_v40 }
  0x69   :  { %964 = vmatmul.bf16.vlgmr.msra.gmra.mxu2 %v1844_v16  ;;  %938 = vmatmul.bf16.vlgmr.msra.gmra.mxu0 %v1844_v16 }
  0x6a   :  { %982 = vmatpush.bf16.msrb.mxu0 %v1369_v49  ;;  %1008 = vmatpush.bf16.msrb.mxu2 %v1373_v51  ;;  %v1213_v49 = vor.u32 %v1649_v43, %v1210_v44  ;;  %v1645_v51 = vld [vmem:[#allocation2 + $0x74] sm:$0xf0] }
  0x6b   :  { %977 = vmatmul.bf16.vlgmr.msra.gmra.mxu3 %v1846_v17  ;;  %951 = vmatmul.bf16.vlgmr.msra.gmra.mxu1 %v1846_v17 }
  0x6c   :  { %995 = vmatpush.bf16.msrb.mxu1 %v1625_v50  ;;  %1021 = vmatpush.bf16.msrb.mxu3 %v1629_v55  ;;  %v1176_v50 = vld [vmem:[#allocation2 + $0x58] sm:$0xf]  ;;  %v1641_v55 = vld [vmem:[#allocation2 + $0x5c] sm:$0xf] }
  0x6d   :  { %v1177_v59 = vor.u32 %v1645_v51, %v1176_v50 }
  0x6e   :  { %983 = vmatpush.bf16.msrb.mxu0 %v1337_v61  ;;  %1009 = vmatpush.bf16.msrb.mxu2 %v1341_v63  ;;  %v1181_v61 = vor.u32 %v1641_v55, %v1178_v56  ;;  %v1637_v63 = vld [vmem:[#allocation2 + $0x34] sm:$0xf0] }
  0x70   :  { %996 = vmatpush.bf16.msrb.mxu1 %v1593_v62  ;;  %1022 = vmatpush.bf16.msrb.mxu3 %v1597_v3  ;;  %v1144_v62 = vld [vmem:[#allocation2 + $0x18] sm:$0xf]  ;;  %v1633_v3 = vld [vmem:[#allocation2 + $0x1c] sm:$0xf] }
  0x71   :  { %v1145_v7 = vor.u32 %v1637_v63, %v1144_v62 }
  0x72   :  { %984 = vmatpush.bf16.msrb.mxu0 %v1305_v9  ;;  %1010 = vmatpush.bf16.msrb.mxu2 %v1309_v11  ;;  %v1149_v9 = vor.u32 %v1633_v3, %v1146_v4 }
  0x74   :  { %997 = vmatpush.bf16.msrb.mxu1 %v1561_v10  ;;  %1023 = vmatpush.bf16.msrb.mxu3 %v1565_v15  ;;  %v1405_v10 = vor.u32 %v1697_v5, %v1402_v6 }
  0x76   :  { %985 = vmatpush.bf16.msrb.mxu0 %v1273_v23  ;;  %1011 = vmatpush.bf16.msrb.mxu2 %v1277_v25  ;;  %v172_v25 = vperm.slane %v1867_v13, 2 }
  0x78   :  { %998 = vmatpush.bf16.msrb.mxu1 %v1529_v24  ;;  %1024 = vmatpush.bf16.msrb.mxu3 %v1533_v29 }
  0x7a   :  { %986 = vmatpush.bf16.msrb.mxu0 %v1241_v35  ;;  %1012 = vmatpush.bf16.msrb.mxu2 %v1245_v37 }
  0x7c   :  { %999 = vmatpush.bf16.msrb.mxu1 %v1497_v36  ;;  %1025 = vmatpush.bf16.msrb.mxu3 %v1501_v41 }
  0x7e   :  { %987 = vmatpush.bf16.msrb.mxu0 %v1209_v47  ;;  %1013 = vmatpush.bf16.msrb.mxu2 %v1213_v49 }
  0x80   :  { %1000 = vmatpush.bf16.msrb.mxu1 %v1465_v48  ;;  %1026 = vmatpush.bf16.msrb.mxu3 %v1469_v53 }
  0x82   :  { %988 = vmatpush.bf16.msrb.mxu0 %v1177_v59  ;;  %1014 = vmatpush.bf16.msrb.mxu2 %v1181_v61 }
  0x84   :  { %1001 = vmatpush.bf16.msrb.mxu1 %v1433_v60  ;;  %1027 = vmatpush.bf16.msrb.mxu3 %v1437_v1 }
  0x86   :  { %989 = vmatpush.bf16.msrb.mxu0 %v1145_v7  ;;  %1015 = vmatpush.bf16.msrb.mxu2 %v1149_v9 }
  0x88   :  { %1002 = vmatpush.bf16.msrb.mxu1 %v1401_v8  ;;  %1028 = vmatpush.bf16.msrb.mxu3 %v1405_v10  ;;  %v175_v10 = vperm.slane %v1867_v13, 5 }
  0x89   :  { %990 = vmatmul.bf16.vlgmr.msrb.gmra.mxu0 %v1844_v16  ;;  %1016 = vmatmul.bf16.vlgmr.msrb.gmra.mxu2 %v1844_v16 }
  0x8b   :  { %1003 = vmatmul.bf16.vlgmr.msrb.gmra.mxu1 %v1846_v17  ;;  %1029 = vmatmul.bf16.vlgmr.msrb.gmra.mxu3 %v1846_v17 }
  0xaa   :  { %v835_v11 = vpop.f32.mrf.mxu0 }
  0xab   :  { %v836_v24 = vadd.f32 %v835_v11, %v170_v21  ;;  %v174_v11 = vperm.slane %v1867_v13, 4 }
  0xac   :  { %v848_v12 = vpop.f32.mrf.mxu1 }
  0xad   :  { %v849_v26 = vadd.f32 %v848_v12, %v836_v24 }
  0xaf   :  { %v1034_v31 = vadd.f32 3.0, %v849_v26 }
  0xb0   :  { %v861_v14 = vpop.f32.mrf.mxu2 }
  0xb1   :  { %v862_v22 = vadd.f32 %v861_v14, %v171_v18  ;;  %v1042_v37 = vmax.f32 %v1034_v31, 0.0  ;;  %v176_v18 = vperm.slane %v1867_v13, 6 }
  0xb2   :  { %v874_v15 = vpop.f32.mrf.mxu3  ;;  %v837_v19 = vpop.f32.mrf.mxu0 }
  0xb3   :  { %v875_v17 = vadd.f32 %v874_v15, %v862_v22  ;;  %v1050_v46 = vmin.f32 %v1042_v37, 6.0 }
  0xb4   :  { %v850_v20 = vpop.f32.mrf.mxu1 }
  0xb5   :  { %v1035_v27 = vadd.f32 3.0, %v875_v17  ;;  %v1058_v52 = vmul.f32 %v1050_v46, %v849_v26 }
  0xb7   :  { %v1043_v32 = vmax.f32 %v1035_v27, 0.0  ;;  %v1066_v58 = vmul.f32 0.16666667, %v1058_v52 }
  0xb8   :  { %v863_v23 = vpop.f32.mrf.mxu2 }
  0xb9   :  { %v1051_v38 = vmin.f32 %v1043_v32, 6.0 }
  0xba   :  { %v876_v16 = vpop.f32.mrf.mxu3 }
  0xbb   :  { %v1059_v47 = vmul.f32 %v1051_v38, %v875_v17 }
  0xbd   :  { %v1067_v53 = vmul.f32 0.16666667, %v1059_v47 }
  0xbf   :  { %v1082_v59 = vrot.slane %v1067_v53, 6 }
  0xc1   :  { %v1089_v63 = vsel %vm1088_vm0, %v1066_v58, %v1082_v59 }
  0xc6   :  { %v887_v28 = vpop.f32.mrf.mxu0 }
  0xc7   :  { %v888_v29 = vadd.f32 %v887_v28, %v172_v25  ;;  %v177_v25 = vperm.slane %v1867_v13, 7 }
  0xc8   :  { %v900_v30 = vpop.f32.mrf.mxu1 }
  0xc9   :  { %v901_v34 = vadd.f32 %v900_v30, %v888_v29 }
  0xcb   :  { %v1036_v36 = vadd.f32 3.0, %v901_v34 }
  0xcc   :  { %v913_v35 = vpop.f32.mrf.mxu2 }
  0xcd   :  { %v914_v39 = vadd.f32 %v913_v35, %v173_v33  ;;  %v1044_v41 = vmax.f32 %v1036_v36, 0.0 }
  0xce   :  { %v926_v40 = vpop.f32.mrf.mxu3  ;;  %v889_v43 = vpop.f32.mrf.mxu0 }
  0xcf   :  { %v927_v42 = vadd.f32 %v926_v40, %v914_v39  ;;  %v1052_v44 = vmin.f32 %v1044_v41, 6.0 }
  0xd0   :  { %v902_v45 = vpop.f32.mrf.mxu1 }
  0xd1   :  { %v1037_v48 = vadd.f32 3.0, %v927_v42  ;;  %v1060_v49 = vmul.f32 %v1052_v44, %v901_v34 }
  0xd3   :  { %v1045_v50 = vmax.f32 %v1037_v48, 0.0  ;;  %v1068_v54 = vmul.f32 0.16666667, %v1060_v49 }
  0xd4   :  { %v915_v51 = vpop.f32.mrf.mxu2 }
  0xd5   :  { %v1053_v55 = vmin.f32 %v1045_v50, 6.0  ;;  %v1083_v60 = vrot.slane %v1068_v54, 4 }
  0xd6   :  { %v928_v56 = vpop.f32.mrf.mxu3 }
  0xd7   :  { %v1061_v57 = vmul.f32 %v1053_v55, %v927_v42 }
  0xd9   :  { %v1069_v61 = vmul.f32 0.16666667, %v1061_v57 }
  0xdb   :  { %v1084_v62 = vrot.slane %v1069_v61, 2 }
  0xdd   :  { %v1091_v0 = vsel %vm1090_vm1, %v1083_v60, %v1084_v62 }
  0xde   :  { %v1093_v1 = vsel %vm1092_vm2, %v1089_v63, %v1091_v0 }
  0xdf   :  { %1099 = vst [vmem:[#allocation5] sm:$0xff] %v1093_v1 }
  0xe6   :  { %v939_v2 = vpop.f32.mrf.mxu0 }
  0xe7   :  { %v940_v14 = vadd.f32 %v939_v2, %v174_v11 }
  0xe8   :  { %v952_v3 = vpop.f32.mrf.mxu1 }
  0xe9   :  { %v953_v19 = vadd.f32 %v952_v3, %v940_v14 }
  0xeb   :  { %v1038_v24 = vadd.f32 3.0, %v953_v19 }
  0xec   :  { %v965_v4 = vpop.f32.mrf.mxu2 }
  0xed   :  { %v966_v12 = vadd.f32 %v965_v4, %v175_v10  ;;  %v1046_v29 = vmax.f32 %v1038_v24, 0.0 }
  0xee   :  { %v978_v5 = vpop.f32.mrf.mxu3  ;;  %v941_v6 = vpop.f32.mrf.mxu0 }
  0xef   :  { %v979_v15 = vadd.f32 %v978_v5, %v966_v12  ;;  %v1054_v37 = vmin.f32 %v1046_v29, 6.0 }
  0xf0   :  { %v954_v7 = vpop.f32.mrf.mxu1 }
  0xf1   :  { %v1039_v20 = vadd.f32 3.0, %v979_v15  ;;  %v1062_v43 = vmul.f32 %v1054_v37, %v953_v19 }
  0xf3   :  { %v1047_v17 = vmax.f32 %v1039_v20, 0.0  ;;  %v1070_v48 = vmul.f32 0.16666667, %v1062_v43 }
  0xf4   :  { %v967_v8 = vpop.f32.mrf.mxu2 }
  0xf5   :  { %v1055_v30 = vmin.f32 %v1047_v17, 6.0 }
  0xf6   :  { %v980_v9 = vpop.f32.mrf.mxu3 }
  0xf7   :  { %v1063_v38 = vmul.f32 %v1055_v30, %v979_v15 }
  0xf9   :  { %v1071_v44 = vmul.f32 0.16666667, %v1063_v38 }
  0xfb   :  { %v1085_v49 = vrot.slane %v1071_v44, 6 }
  0xfd   :  { %v1094_v53 = vsel %vm1088_vm0, %v1070_v48, %v1085_v49 }
 0x106   :  { %v991_v21 = vpop.f32.mrf.mxu0 }
 0x107   :  { %v992_v22 = vadd.f32 %v991_v21, %v176_v18 }
 0x108   :  { %v1004_v23 = vpop.f32.mrf.mxu1 }
 0x109   :  { %v1005_v16 = vadd.f32 %v1004_v23, %v992_v22 }
 0x10b   :  { %v1040_v26 = vadd.f32 3.0, %v1005_v16 }
 0x10c   :  { %v1017_v28 = vpop.f32.mrf.mxu2 }
 0x10d   :  { %v1048_v27 = vmax.f32 %v1040_v26, 0.0  ;;  %v1018_v31 = vadd.f32 %v1017_v28, %v177_v25 }
 0x10e   :  { %v1030_v32 = vpop.f32.mrf.mxu3  ;;  %v993_v33 = vpop.f32.mrf.mxu0 }
 0x10f   :  { %v1056_v35 = vmin.f32 %v1048_v27, 6.0  ;;  %v1031_v36 = vadd.f32 %v1030_v32, %v1018_v31 }
 0x110   :  { %v1006_v34 = vpop.f32.mrf.mxu1 }
 0x111   :  { %v1041_v39 = vadd.f32 3.0, %v1031_v36  ;;  %v1064_v40 = vmul.f32 %v1056_v35, %v1005_v16 }
 0x113   :  { %v1049_v41 = vmax.f32 %v1041_v39, 0.0  ;;  %v1072_v46 = vmul.f32 0.16666667, %v1064_v40 }
 0x114   :  { %v1019_v42 = vpop.f32.mrf.mxu2 }
 0x115   :  { %v1057_v13 = vmin.f32 %v1049_v41, 6.0  ;;  %v1086_v51 = vrot.slane %v1072_v46, 4 }
 0x116   :  { %v1032_v45 = vpop.f32.mrf.mxu3 }
 0x117   :  { %v1065_v47 = vmul.f32 %v1057_v13, %v1031_v36 }
 0x119   :  { %v1073_v50 = vmul.f32 0.16666667, %v1065_v47 }
 0x11b   :  { %v1087_v52 = vrot.slane %v1073_v50, 2 }
 0x11d   :  { %v1095_v54 = vsel %vm1090_vm1, %v1086_v51, %v1087_v52 }
 0x11e   :  { %v1096_v55 = vsel %vm1092_vm2, %v1094_v53, %v1095_v54 }
 0x11f   :  { %1100 = vst [vmem:[#allocation5 + $0x8] sm:$0xff] %v1096_v55 }
 0x120   :  { %1111 = dma.vmem_to_hbm [thread:$0]  %s1107_s21, 256, %s1109_s24, [#allocation4]  }
 0x121   :  { %1812 = dma.done.wait [#allocation4], 256  }
 0x122   :  { %1813 = vsyncadd [#allocation4], 4294967040 }
 0x123   :  { %1116 = vsyncpa [#allocation3], 1 }
 0x124   :  { %1117 = vsyncpa [#allocation4], 1 }

</bundles_post_ra>
